<compile_context>
chip_gen: v5e
topology: v5e:2x2
jax: 0.10.0
libtpu: 0.0.40
codegen_flags: <defaults>
</compile_context>

<pallas_src>
import jax
import jax.numpy as jnp
from jax.experimental import pallas as pl
from jax.experimental.pallas import tpu as pltpu


def _add_conv1x1_kernel(a_ref, b_ref, w_ref, o_ref):
    # Fused: out_tile = W_tile @ (a + b).  Add on the VPU, matmul on the MXU.
    # a/b are VMEM-resident across the whole grid (constant block index), so
    # recomputing the tiny (160, 196) add per step is essentially free.
    x = a_ref[...] + b_ref[...]
    o_ref[...] = jnp.dot(
        w_ref[...], x, preferred_element_type=jnp.float32
    ).astype(o_ref.dtype)


def add_conv1x1(x382, x367, weight, *, n_cout_tiles=4):
    """x382, x367: (N, C_in, H, W) float32; weight: (C_out, C_in, 1, 1).

    Returns (N, C_out, H, W) float32, matching PyTorch Conv2d(1x1, bias=False)
    applied to (x382 + x367).
    """
    N, C_in, H, W = x382.shape
    C_out = weight.shape[0]
    assert N == 1  # TODO(synk): general N would need a batch grid axis.
    tokens = N * H * W

    # Free (no-transpose) views into kernel-native channels-first layout.
    a = x382.reshape(C_in, tokens)
    b = x367.reshape(C_in, tokens)
    w = weight.reshape(C_out, C_in)

    # Tile C_out for DMA/compute/writeback overlap (keep the grid small:
    # per-step overhead is comparable to the compute here).
    if C_out % n_cout_tiles != 0 or (C_out // n_cout_tiles) % 8 != 0:
        n_cout_tiles = 1
    tc = C_out // n_cout_tiles

    flops = 2 * C_out * C_in * tokens
    bytes_accessed = 4 * (2 * C_in * tokens + C_out * C_in + C_out * tokens)

    out = pl.pallas_call(
        _add_conv1x1_kernel,
        out_shape=jax.ShapeDtypeStruct((C_out, tokens), jnp.float32),
        grid=(n_cout_tiles,),
        in_specs=[
            pl.BlockSpec((C_in, tokens), lambda j: (0, 0)),  # resident
            pl.BlockSpec((C_in, tokens), lambda j: (0, 0)),  # resident
            pl.BlockSpec((tc, C_in), lambda j: (j, 0)),      # weight tile
        ],
        out_specs=pl.BlockSpec((tc, tokens), lambda j: (j, 0)),
        compiler_params=pltpu.CompilerParams(
            dimension_semantics=("parallel",),
        ),
        cost_estimate=pl.CostEstimate(
            flops=flops, transcendentals=0, bytes_accessed=bytes_accessed
        ),
    )(a, b, w)

    # (C_out, H*W) -> NCHW, free reshape for N == 1.
    return out.reshape(N, C_out, H, W)


if __name__ == "__main__":
    key = jax.random.PRNGKey(0)
    k1, k2, k3 = jax.random.split(key, 3)

    N, C_in, H, W, C_out = 1, 160, 14, 14, 960

    x382 = jax.random.normal(k1, (N, C_in, H, W), dtype=jnp.float32)
    x367 = jax.random.normal(k2, (N, C_in, H, W), dtype=jnp.float32)
    # Deterministic conv weight (kaiming-uniform-like scale), (C_out, C_in, 1, 1).
    bound = 1.0 / (C_in ** 0.5)
    weight = jax.random.uniform(
        k3, (C_out, C_in, 1, 1), dtype=jnp.float32, minval=-bound, maxval=bound
    )

    out = add_conv1x1(x382, x367, weight)
    out = jax.block_until_ready(out)

    # Reference in plain JAX: (x382 + x367) then 1x1 conv.
    xsum = x382 + x367
    ref = jnp.einsum("nchw,oc->nohw", xsum, weight.reshape(C_out, C_in))
    assert out.shape == (N, C_out, H, W)
    assert jnp.allclose(out, ref, atol=2e-4, rtol=2e-4)

    print("KERNEL_OK")
</pallas_src>

<mosaic_0001>
module attributes {stable_mosaic.version = 11 : i64} {
  func.func @_add_conv1x1_kernel(%arg0: i32, %arg1: memref<160x196xf32, #tpu.memory_space<vmem>>, %arg2: memref<160x196xf32, #tpu.memory_space<vmem>>, %arg3: memref<240x160xf32, #tpu.memory_space<vmem>>, %arg4: memref<240x196xf32, #tpu.memory_space<vmem>>) attributes {dimension_semantics = [#tpu.dimension_semantics<parallel>], iteration_bounds = array<i64: 4>, scalar_prefetch = 0 : i64, scratch_operands = 0 : i64, tpu.core_type = #tpu.core_type<tc>, window_params = [{pipeline_mode = #tpu.pipeline_mode<synchronous>, transform_indices = @transform_0, window_bounds = array<i64: 160, 196>}, {pipeline_mode = #tpu.pipeline_mode<synchronous>, transform_indices = @transform_1, window_bounds = array<i64: 160, 196>}, {transform_indices = @transform_2, window_bounds = array<i64: 240, 160>}, {transform_indices = @transform_3, window_bounds = array<i64: 240, 196>}]} {
    %c0 = arith.constant 0 : index
    %c0_0 = arith.constant 0 : index
    %0 = vector.load %arg1[%c0, %c0_0] : memref<160x196xf32, #tpu.memory_space<vmem>>, vector<160x196xf32>
    %c0_1 = arith.constant 0 : index
    %c0_2 = arith.constant 0 : index
    %1 = vector.load %arg2[%c0_1, %c0_2] : memref<160x196xf32, #tpu.memory_space<vmem>>, vector<160x196xf32>
    %2 = arith.addf %0, %1 : vector<160x196xf32>
    %c0_3 = arith.constant 0 : index
    %c0_4 = arith.constant 0 : index
    %3 = vector.load %arg3[%c0_3, %c0_4] : memref<240x160xf32, #tpu.memory_space<vmem>>, vector<240x160xf32>
    %cst = arith.constant dense<0.000000e+00> : vector<240x196xf32>
    %4 = tpu.matmul %3, %2, %cst {dimension_numbers = #tpu.dot_dimension_numbers<[1], [0], [0], [1], [0, 0, 1, 1], [], []>} : vector<240x160xf32>, vector<160x196xf32>, vector<240x196xf32> -> vector<240x196xf32>
    %c0_5 = arith.constant 0 : index
    %c0_6 = arith.constant 0 : index
    %5 = vector.load %arg4[%c0_5, %c0_6] : memref<240x196xf32, #tpu.memory_space<vmem>>, vector<240x196xf32>
    tpu.vector_store %arg4[%c0_5, %c0_6], %4 {strides = array<i32>} : memref<240x196xf32, #tpu.memory_space<vmem>>, vector<240x196xf32>,
    return
  }
  func.func @transform_0(%arg0: i32) -> (i32, i32) {
    %c0_i32 = arith.constant 0 : i32
    %c0_i32_0 = arith.constant 0 : i32
    %c0_i32_1 = arith.constant 0 : i32
    return %c0_i32, %c0_i32_0 : i32, i32
  }
  func.func @transform_1(%arg0: i32) -> (i32, i32) {
    %c0_i32 = arith.constant 0 : i32
    %c0_i32_0 = arith.constant 0 : i32
    %c0_i32_1 = arith.constant 0 : i32
    return %c0_i32, %c0_i32_0 : i32, i32
  }
  func.func @transform_2(%arg0: i32) -> (i32, i32) {
    %c0_i32 = arith.constant 0 : i32
    %c0_i32_0 = arith.constant 0 : i32
    return %arg0, %c0_i32 : i32, i32
  }
  func.func @transform_3(%arg0: i32) -> (i32, i32) {
    %c0_i32 = arith.constant 0 : i32
    %c0_i32_0 = arith.constant 0 : i32
    return %arg0, %c0_i32 : i32, i32
  }
}

</mosaic_0001>

<bundles_post_ra>
// kernel: tpu_custom_call.1
= control target key start
LH: loop header
LB: loop body
LE: loop exit
PB: predicated region body
PF: predicated region fallthrough
CT: control target
= control target key end

     0   :  { %s1106_s12 = smov 0   ;;  %s1592_s0 = inlined_call_operand.vmem [shape: f32[160,196], index: 0, kind: input, shape index: {}]   ;;  %s1593_s1 = inlined_call_operand.vmem [shape: f32[160,196], index: 1, kind: input, shape index: {}]   ;;  %s1594_s2 = inlined_call_operand.vmem [shape: f32[960,160], index: 2, kind: input, shape index: {}]   ;;  %s1595_s3 = inlined_call_operand.vmem [shape: f32[960,196], index: 3, kind: output, shape index: {}]  }
   0x1 LB: > { %s997_s13 = sadd.s32 4294967295, %s1084_s12   ;;  %p1001_p0 = scmp.ge.s32.totalorder %s1084_s12, 1  ;;  %s1084_s12 = sphi %s1106_s12, %s13_s12  }
   0x2   : > { %p139_p1 = scmp.lt.s32.totalorder %s1084_s12, 5 }
   0x4   : > { %p140_p2 = pnand %p1001_p0, %p139_p1 }
   0x5   : > { %s1182_s6 = smul.u32 (!%p140_p2), 30, %s997_s13 }
   0x6   : > { %143 = sbr.rel (%p140_p2) target bundleno = 413 (0x19d), region = 32 }
   0x7   : > { %p166_p3 = scmp.lt.s32.totalorder (!%p140_p2), %s1182_s6, 119 }
   0xb   : > { %v210_v0 = vld [vmem:[%s1592_s0 + $0xf8] sm:$0xff]  ;;  %v208_v2 = vld [vmem:[%s1592_s0 + $0xe8] sm:$0xff]  ;;  %v209_v8 = vld [vmem:[%s1592_s0 + $0xf0] sm:$0xff]  ;;  %s1597_s6 = smov (!%p166_p3, %s1182_s6), 119  ;;  %vm359_vm0 = vcmask 261120   ;;  %vm879_vm1 = vcmask 556032  }
   0xc   : > { %v250_v1 = vld [vmem:[%s1593_s1 + $0xf8] sm:$0xff]  ;;  %v248_v4 = vld [vmem:[%s1593_s1 + $0xe8] sm:$0xff]  ;;  %v249_v9 = vld [vmem:[%s1593_s1 + $0xf0] sm:$0xff]  ;;  %s1068_s22 = sshll.u32 %s1597_s6, 4 }
   0xd   : > { %v290_v3 = vadd.f32 %v250_v1, %v210_v0  ;;  %v206_v5 = vld [vmem:[%s1592_s0 + $0xd8] sm:$0xff]  ;;  %v288_v7 = vadd.f32 %v248_v4, %v208_v2  ;;  %v204_v10 = vld [vmem:[%s1592_s0 + $0xc8] sm:$0xff]  ;;  %v289_v12 = vadd.f32 %v249_v9, %v209_v8  ;;  %v207_v14 = vld [vmem:[%s1592_s0 + $0xe0] sm:$0xff]  ;;  %s1322_s20 = scalar_lea.vmem %s1594_s2, %s1068_s22  ;;  %s1444_s7 = scalar_lea.vmem %s1595_s3, %s1068_s22 }
   0xe   : > { %v246_v6 = vld [vmem:[%s1593_s1 + $0xd8] sm:$0xff]  ;;  %v244_v13 = vld [vmem:[%s1593_s1 + $0xc8] sm:$0xff]  ;;  %v247_v15 = vld [vmem:[%s1593_s1 + $0xe0] sm:$0xff] }
   0xf   : > { %664 = vmatpush.msra.mxu2 %v290_v3  ;;  %v286_v11 = vadd.f32 %v246_v6, %v206_v5  ;;  %v287_v16 = vadd.f32 %v247_v15, %v207_v14  ;;  %v202_v17 = vld [vmem:[%s1592_s0 + $0xb8] sm:$0xff]  ;;  %v205_v19 = vld [vmem:[%s1592_s0 + $0xd0] sm:$0xff]  ;;  %450 = vmatpush.msra.mxu0 %v289_v12  ;;  %v284_v20 = vadd.f32 %v244_v13, %v204_v10  ;;  %v200_v22 = vld [vmem:[%s1592_s0 + $0xa8] sm:$0xff] }
  0x10   : > { %v242_v18 = vld [vmem:[%s1593_s1 + $0xb8] sm:$0xff]  ;;  %v245_v21 = vld [vmem:[%s1593_s1 + $0xd0] sm:$0xff]  ;;  %v240_v24 = vld [vmem:[%s1593_s1 + $0xa8] sm:$0xff] }
  0x11   : > { %665 = vmatpush.msra.mxu2 %v288_v7  ;;  %v285_v23 = vadd.f32 %v245_v21, %v205_v19  ;;  %v203_v25 = vld [vmem:[%s1592_s0 + $0xc0] sm:$0xff]  ;;  %451 = vmatpush.msra.mxu0 %v287_v16  ;;  %v282_v27 = vadd.f32 %v242_v18, %v202_v17  ;;  %v201_v29 = vld [vmem:[%s1592_s0 + $0xb0] sm:$0xff]  ;;  %v198_v31 = vld [vmem:[%s1592_s0 + $0x98] sm:$0xff]  ;;  %v280_v34 = vadd.f32 %v240_v24, %v200_v22 }
  0x12   : > { %v243_v26 = vld [vmem:[%s1593_s1 + $0xc0] sm:$0xff]  ;;  %v241_v30 = vld [vmem:[%s1593_s1 + $0xb0] sm:$0xff]  ;;  %v238_v32 = vld [vmem:[%s1593_s1 + $0x98] sm:$0xff] }
  0x13   : > { %666 = vmatpush.msra.mxu2 %v286_v11  ;;  %v283_v28 = vadd.f32 %v243_v26, %v203_v25  ;;  %v199_v33 = vld [vmem:[%s1592_s0 + $0xa0] sm:$0xff]  ;;  %452 = vmatpush.msra.mxu0 %v285_v23  ;;  %v281_v35 = vadd.f32 %v241_v30, %v201_v29  ;;  %v196_v36 = vld [vmem:[%s1592_s0 + $0x88] sm:$0xff]  ;;  %v197_v39 = vld [vmem:[%s1592_s0 + $0x90] sm:$0xff]  ;;  %v278_v41 = vadd.f32 %v238_v32, %v198_v31 }
  0x14   : > { %v239_v37 = vld [vmem:[%s1593_s1 + $0xa0] sm:$0xff]  ;;  %v236_v38 = vld [vmem:[%s1593_s1 + $0x88] sm:$0xff]  ;;  %v237_v40 = vld [vmem:[%s1593_s1 + $0x90] sm:$0xff] }
  0x15   : > { %667 = vmatpush.msra.mxu2 %v284_v20  ;;  %453 = vmatpush.msra.mxu0 %v283_v28  ;;  %v279_v42 = vadd.f32 %v239_v37, %v199_v33  ;;  %v194_v43 = vld [vmem:[%s1592_s0 + $0x78] sm:$0xff]  ;;  %v195_v45 = vld [vmem:[%s1592_s0 + $0x80] sm:$0xff]  ;;  %v276_v47 = vadd.f32 %v236_v38, %v196_v36  ;;  %v277_v48 = vadd.f32 %v237_v40, %v197_v39  ;;  %v192_v49 = vld [vmem:[%s1592_s0 + $0x68] sm:$0xff] }
  0x16   : > { %v234_v44 = vld [vmem:[%s1593_s1 + $0x78] sm:$0xff]  ;;  %v235_v46 = vld [vmem:[%s1593_s1 + $0x80] sm:$0xff]  ;;  %v232_v50 = vld [vmem:[%s1593_s1 + $0x68] sm:$0xff] }
  0x17   : > { %668 = vmatpush.msra.mxu2 %v282_v27  ;;  %454 = vmatpush.msra.mxu0 %v281_v35  ;;  %v190_v51 = vld [vmem:[%s1592_s0 + $0x58] sm:$0xff]  ;;  %v193_v52 = vld [vmem:[%s1592_s0 + $0x70] sm:$0xff]  ;;  %v274_v54 = vadd.f32 %v234_v44, %v194_v43  ;;  %v275_v55 = vadd.f32 %v235_v46, %v195_v45  ;;  %v188_v59 = vld [vmem:[%s1592_s0 + $0x48] sm:$0xff]  ;;  %v272_v63 = vadd.f32 %v232_v50, %v192_v49 }
  0x18   : > { %v233_v53 = vld [vmem:[%s1593_s1 + $0x70] sm:$0xff]  ;;  %v230_v56 = vld [vmem:[%s1593_s1 + $0x58] sm:$0xff]  ;;  %v191_v60 = vld [vmem:[%s1592_s0 + $0x60] sm:$0xff] }
  0x19   : > { %669 = vmatpush.msra.mxu2 %v280_v34  ;;  %455 = vmatpush.msra.mxu0 %v279_v42  ;;  %v218_v57 = vld [vmem:[%s1592_s0 + $0x138] sm:$0xff]  ;;  %v231_v61 = vld [vmem:[%s1593_s1 + $0x60] sm:$0xff]  ;;  %v273_v0 = vadd.f32 %v233_v53, %v193_v52  ;;  %v228_v1 = vld [vmem:[%s1593_s1 + $0x48] sm:$0xff]  ;;  %v270_v8 = vadd.f32 %v230_v56, %v190_v51 }
  0x1a   : > { %v258_v58 = vld [vmem:[%s1593_s1 + $0x138] sm:$0xff]  ;;  %v216_v2 = vld [vmem:[%s1592_s0 + $0x128] sm:$0xff]  ;;  %v189_v5 = vld [vmem:[%s1592_s0 + $0x50] sm:$0xff]  ;;  %v271_v9 = vadd.f32 %v231_v61, %v191_v60  ;;  %v268_v18 = vadd.f32 %v228_v1, %v188_v59 }
  0x1b   : > { %670 = vmatpush.msra.mxu2 %v278_v41  ;;  %v298_v62 = vadd.f32 %v258_v58, %v218_v57  ;;  %456 = vmatpush.msra.mxu0 %v277_v48  ;;  %v256_v3 = vld [vmem:[%s1593_s1 + $0x128] sm:$0xff]  ;;  %v186_v4 = vld [vmem:[%s1592_s0 + $0x38] sm:$0xff]  ;;  %v229_v6 = vld [vmem:[%s1593_s1 + $0x50] sm:$0xff] }
  0x1c   : > { %v296_v7 = vadd.f32 %v256_v3, %v216_v2  ;;  %v226_v10 = vld [vmem:[%s1593_s1 + $0x38] sm:$0xff]  ;;  %v184_v13 = vld [vmem:[%s1592_s0 + $0x28] sm:$0xff]  ;;  %v187_v14 = vld [vmem:[%s1592_s0 + $0x40] sm:$0xff]  ;;  %v269_v19 = vadd.f32 %v229_v6, %v189_v5 }
  0x1d   : > { %671 = vmatpush.msra.mxu2 %v276_v47  ;;  %783 = vmatpush.msra.mxu3 %v298_v62  ;;  %v214_v11 = vld [vmem:[%s1592_s0 + $0x118] sm:$0xff]  ;;  %v227_v15 = vld [vmem:[%s1593_s1 + $0x40] sm:$0xff]  ;;  %v217_v17 = vld [vmem:[%s1592_s0 + $0x130] sm:$0xff]  ;;  %v266_v27 = vadd.f32 %v226_v10, %v186_v4 }
  0x1e   : > { %457 = vmatpush.msra.mxu0 %v275_v55  ;;  %v254_v12 = vld [vmem:[%s1593_s1 + $0x118] sm:$0xff]  ;;  %v224_v20 = vld [vmem:[%s1593_s1 + $0x28] sm:$0xff]  ;;  %v185_v21 = vld [vmem:[%s1592_s0 + $0x30] sm:$0xff]  ;;  %v267_v28 = vadd.f32 %v227_v15, %v187_v14 }
  0x1f   : > { %672 = vmatpush.msra.mxu2 %v274_v54  ;;  %784 = vmatpush.msra.mxu3 %v296_v7  ;;  %v294_v16 = vadd.f32 %v254_v12, %v214_v11  ;;  %v257_v22 = vld [vmem:[%s1593_s1 + $0x130] sm:$0xff]  ;;  %v212_v25 = vld [vmem:[%s1592_s0 + $0x108] sm:$0xff]  ;;  %v182_v29 = vld [vmem:[%s1592_s0 + $0x18] sm:$0xff]  ;;  %v264_v38 = vadd.f32 %v224_v20, %v184_v13 }
  0x20   : > { %458 = vmatpush.msra.mxu0 %v273_v0  ;;  %v225_v23 = vld [vmem:[%s1593_s1 + $0x30] sm:$0xff]  ;;  %v297_v24 = vadd.f32 %v257_v22, %v217_v17  ;;  %v252_v26 = vld [vmem:[%s1593_s1 + $0x108] sm:$0xff]  ;;  %v222_v30 = vld [vmem:[%s1593_s1 + $0x18] sm:$0xff] }
  0x21   : > { %673 = vmatpush.msra.mxu2 %v272_v63  ;;  %785 = vmatpush.msra.mxu3 %v294_v16  ;;  %v292_v31 = vadd.f32 %v252_v26, %v212_v25  ;;  %v183_v32 = vld [vmem:[%s1592_s0 + $0x20] sm:$0xff]  ;;  %v180_v33 = vld [vmem:[%s1592_s0 + $0x8] sm:$0xff]  ;;  %v265_v39 = vadd.f32 %v225_v23, %v185_v21  ;;  %v213_v42 = vld [vmem:[%s1592_s0 + $0x110] sm:$0xff]  ;;  %v262_v48 = vadd.f32 %v222_v30, %v182_v29 }
  0x22   : > { %459 = vmatpush.msra.mxu0 %v271_v9  ;;  %569 = vmatpush.msra.mxu1 %v297_v24  ;;  %v220_v34 = vld [vmem:[%s1593_s1 + $0x8] sm:$0xff]  ;;  %v223_v35 = vld [vmem:[%s1593_s1 + $0x20] sm:$0xff]  ;;  %v253_v43 = vld [vmem:[%s1593_s1 + $0x110] sm:$0xff] }
  0x23   : > { %674 = vmatpush.msra.mxu2 %v270_v8  ;;  %v215_v36 = vld [vmem:[%s1592_s0 + $0x120] sm:$0xff]  ;;  %v300_v40 = vld [vmem:[%s1322_s20 + $0x8] sm:$0xff]  ;;  %786 = vmatpush.msra.mxu3 %v292_v31  ;;  %v181_v44 = vld [vmem:[%s1592_s0 + $0x10] sm:$0xff]  ;;  %v293_v46 = vadd.f32 %v253_v43, %v213_v42  ;;  %v263_v49 = vadd.f32 %v223_v35, %v183_v32  ;;  %v260_v54 = vadd.f32 %v220_v34, %v180_v33 }
  0x24   : > { %v255_v37 = vld [vmem:[%s1593_s1 + $0x120] sm:$0xff]  ;;  %460 = vmatpush.msra.mxu0 %v269_v19  ;;  %v221_v45 = vld [vmem:[%s1593_s1 + $0x10] sm:$0xff]  ;;  %1036 = vmatmul.msk.f32.vlgmr.msra.gmra.mxu3 %vm359_vm0, %v300_v40  ;;  %v302_v58 = vld [vmem:[%s1322_s20 + $0x18] sm:$0xff] }
  0x25   : > { %675 = vmatpush.msra.mxu2 %v268_v18  ;;  %v295_v41 = vadd.f32 %v255_v37, %v215_v36  ;;  %v211_v47 = vld [vmem:[%s1592_s0 + $0x100] sm:$0xff]  ;;  %v261_v55 = vadd.f32 %v221_v45, %v181_v44  ;;  %v301_v59 = vld [vmem:[%s1322_s20 + $0x10] sm:$0xff]  ;;  %v304_v60 = vld [vmem:[%s1322_s20 + $0x28] sm:$0xff] }
  0x26   : > { %461 = vmatpush.msra.mxu0 %v267_v28  ;;  %v251_v50 = vld [vmem:[%s1593_s1 + $0x100] sm:$0xff]  ;;  %v306_v62 = vld [vmem:[%s1322_s20 + $0x38] sm:$0xff]  ;;  %v305_v63 = vld [vmem:[%s1322_s20 + $0x30] sm:$0xff] }
  0x27   : > { %676 = vmatpush.msra.mxu2 %v266_v27  ;;  %570 = vmatpush.msra.mxu1 %v295_v41  ;;  %v179_v51 = vld [vmem:[%s1592_s0] sm:$0xff]  ;;  %v291_v53 = vadd.f32 %v251_v50, %v211_v47  ;;  %v308_v0 = vld [vmem:[%s1322_s20 + $0x48] sm:$0xff]  ;;  %v310_v2 = vld [vmem:[%s1322_s20 + $0x58] sm:$0xff] }
  0x28   : > { %v219_v52 = vld [vmem:[%s1593_s1] sm:$0xff]  ;;  %462 = vmatpush.msra.mxu0 %v265_v39  ;;  %v309_v3 = vld [vmem:[%s1322_s20 + $0x50] sm:$0xff]  ;;  %v312_v4 = vld [vmem:[%s1322_s20 + $0x68] sm:$0xff] }
  0x29   : > { %677 = vmatpush.msra.mxu2 %v264_v38  ;;  %571 = vmatpush.msra.mxu1 %v293_v46  ;;  %v299_v56 = vld [vmem:[%s1322_s20] sm:$0xff]  ;;  %v259_v57 = vadd.f32 %v219_v52, %v179_v51  ;;  %v314_v6 = vld [vmem:[%s1322_s20 + $0x78] sm:$0xff]  ;;  %v313_v7 = vld [vmem:[%s1322_s20 + $0x70] sm:$0xff] }
  0x2a   : > { %463 = vmatpush.msra.mxu0 %v263_v49  ;;  %v303_v61 = vld [vmem:[%s1322_s20 + $0x20] sm:$0xff]  ;;  %v316_v8 = vld [vmem:[%s1322_s20 + $0x88] sm:$0xff]  ;;  %v318_v10 = vld [vmem:[%s1322_s20 + $0x98] sm:$0xff] }
  0x2b   : > { %678 = vmatpush.msra.mxu2 %v262_v48  ;;  %572 = vmatpush.msra.mxu1 %v291_v53  ;;  %v307_v1 = vld [vmem:[%s1322_s20 + $0x40] sm:$0xff]  ;;  %v317_v11 = vld [vmem:[%s1322_s20 + $0x90] sm:$0xff]  ;;  %v320_v12 = vld [vmem:[%s1322_s20 + $0xa8] sm:$0xff] }
  0x2c   : > { %464 = vmatpush.msra.mxu0 %v261_v55  ;;  %1006 = vmatmul.msk.f32.vlgmr.msra.gmra.mxu1 %vm359_vm0, %v300_v40  ;;  %v311_v5 = vld [vmem:[%s1322_s20 + $0x60] sm:$0xff]  ;;  %v322_v14 = vld [vmem:[%s1322_s20 + $0xb8] sm:$0xff]  ;;  %v321_v15 = vld [vmem:[%s1322_s20 + $0xb0] sm:$0xff] }
  0x2d   : > { %679 = vmatpush.msra.mxu2 %v260_v54  ;;  %1037 = vmatmul.msk.f32.gmra.mxu3 %vm359_vm0, %v302_v58  ;;  %v315_v9 = vld [vmem:[%s1322_s20 + $0x80] sm:$0xff]  ;;  %v324_v16 = vld [vmem:[%s1322_s20 + $0xc8] sm:$0xff]  ;;  %v326_v18 = vld [vmem:[%s1322_s20 + $0xd8] sm:$0xff] }
  0x2e   : > { %680 = vmatmul.f32.vlgmr.msra.gmra.mxu2 %v299_v56  ;;  %465 = vmatpush.msra.mxu0 %v259_v57  ;;  %v319_v13 = vld [vmem:[%s1322_s20 + $0xa0] sm:$0xff]  ;;  %v325_v19 = vld [vmem:[%s1322_s20 + $0xd0] sm:$0xff]  ;;  %v328_v20 = vld [vmem:[%s1322_s20 + $0xe8] sm:$0xff] }
  0x2f   : > { %466 = vmatmul.f32.vlgmr.msra.gmra.mxu0 %v299_v56  ;;  %v323_v17 = vld [vmem:[%s1322_s20 + $0xc0] sm:$0xff]  ;;  %v330_v22 = vld [vmem:[%s1322_s20 + $0xf8] sm:$0xff]  ;;  %v329_v23 = vld [vmem:[%s1322_s20 + $0xf0] sm:$0xff] }
  0x30   : > { %v327_v21 = vld [vmem:[%s1322_s20 + $0xe0] sm:$0xff]  ;;  %v332_v24 = vld [vmem:[%s1322_s20 + $0x108] sm:$0xff]  ;;  %v334_v29 = vld [vmem:[%s1322_s20 + $0x118] sm:$0xff] }
  0x31   : > { %v331_v25 = vld [vmem:[%s1322_s20 + $0x100] sm:$0xff]  ;;  %v333_v33 = vld [vmem:[%s1322_s20 + $0x110] sm:$0xff]  ;;  %v336_v37 = vld [vmem:[%s1322_s20 + $0x128] sm:$0xff] }
  0x32   : > { %v335_v41 = vld [vmem:[%s1322_s20 + $0x120] sm:$0xff]  ;;  %v338_v45 = vld [vmem:[%s1322_s20 + $0x138] sm:$0xff]  ;;  %v337_v49 = vld [vmem:[%s1322_s20 + $0x130] sm:$0xff] }
  0x33   : > { %v340_v53 = vld [vmem:[%s1322_s20 + $0x148] sm:$0xff]  ;;  %v339_v57 = vld [vmem:[%s1322_s20 + $0x140] sm:$0xff] }
  0x34   : > { %1007 = vmatmul.msk.f32.gmra.mxu1 %vm359_vm0, %v302_v58 }
  0x35   : > { %1038 = vmatmul.msk.f32.gmra.mxu3 %vm359_vm0, %v304_v60 }
  0x36   : > { %683 = vmatmul.f32.gmra.mxu2 %v301_v59 }
  0x37   : > { %469 = vmatmul.f32.gmra.mxu0 %v301_v59 }
  0x3c   : > { %1008 = vmatmul.msk.f32.gmra.mxu1 %vm359_vm0, %v304_v60 }
  0x3d   : > { %1039 = vmatmul.msk.f32.gmra.mxu3 %vm359_vm0, %v306_v62 }
  0x3e   : > { %686 = vmatmul.f32.gmra.mxu2 %v303_v61 }
  0x3f   : > { %472 = vmatmul.f32.gmra.mxu0 %v303_v61  ;;  %v342_v61 = vld [vmem:[%s1322_s20 + $0x158] sm:$0xff] }
  0x44   : > { %1009 = vmatmul.msk.f32.gmra.mxu1 %vm359_vm0, %v306_v62 }
  0x45   : > { %1040 = vmatmul.msk.f32.gmra.mxu3 %vm359_vm0, %v308_v0 }
  0x46   : > { %689 = vmatmul.f32.gmra.mxu2 %v305_v63 }
  0x47   : > { %475 = vmatmul.f32.gmra.mxu0 %v305_v63 }
  0x4c   : > { %1010 = vmatmul.msk.f32.gmra.mxu1 %vm359_vm0, %v308_v0 }
  0x4d   : > { %1041 = vmatmul.msk.f32.gmra.mxu3 %vm359_vm0, %v310_v2 }
  0x4e   : > { %692 = vmatmul.f32.gmra.mxu2 %v307_v1 }
  0x4f   : > { %478 = vmatmul.f32.gmra.mxu0 %v307_v1  ;;  %v341_v1 = vld [vmem:[%s1322_s20 + $0x150] sm:$0xff] }
  0x54   : > { %1011 = vmatmul.msk.f32.gmra.mxu1 %vm359_vm0, %v310_v2 }
  0x55   : > { %1042 = vmatmul.msk.f32.gmra.mxu3 %vm359_vm0, %v312_v4 }
  0x56   : > { %695 = vmatmul.f32.gmra.mxu2 %v309_v3 }
  0x57   : > { %481 = vmatmul.f32.gmra.mxu0 %v309_v3 }
  0x5c   : > { %1012 = vmatmul.msk.f32.gmra.mxu1 %vm359_vm0, %v312_v4 }
  0x5d   : > { %1043 = vmatmul.msk.f32.gmra.mxu3 %vm359_vm0, %v314_v6 }
  0x5e   : > { %698 = vmatmul.f32.gmra.mxu2 %v311_v5 }
  0x5f   : > { %484 = vmatmul.f32.gmra.mxu0 %v311_v5  ;;  %v344_v5 = vld [vmem:[%s1322_s20 + $0x168] sm:$0xff] }
  0x64   : > { %1013 = vmatmul.msk.f32.gmra.mxu1 %vm359_vm0, %v314_v6 }
  0x65   : > { %1044 = vmatmul.msk.f32.gmra.mxu3 %vm359_vm0, %v316_v8 }
  0x66   : > { %701 = vmatmul.f32.gmra.mxu2 %v313_v7 }
  0x67   : > { %487 = vmatmul.f32.gmra.mxu0 %v313_v7 }
  0x6c   : > { %1014 = vmatmul.msk.f32.gmra.mxu1 %vm359_vm0, %v316_v8 }
  0x6d   : > { %1045 = vmatmul.msk.f32.gmra.mxu3 %vm359_vm0, %v318_v10 }
  0x6e   : > { %704 = vmatmul.f32.gmra.mxu2 %v315_v9 }
  0x6f   : > { %490 = vmatmul.f32.gmra.mxu0 %v315_v9  ;;  %v343_v9 = vld [vmem:[%s1322_s20 + $0x160] sm:$0xff] }
  0x74   : > { %1015 = vmatmul.msk.f32.gmra.mxu1 %vm359_vm0, %v318_v10 }
  0x75   : > { %1046 = vmatmul.msk.f32.gmra.mxu3 %vm359_vm0, %v320_v12 }
  0x76   : > { %707 = vmatmul.f32.gmra.mxu2 %v317_v11 }
  0x77   : > { %493 = vmatmul.f32.gmra.mxu0 %v317_v11 }
  0x7c   : > { %1016 = vmatmul.msk.f32.gmra.mxu1 %vm359_vm0, %v320_v12 }
  0x7d   : > { %1047 = vmatmul.msk.f32.gmra.mxu3 %vm359_vm0, %v322_v14 }
  0x7e   : > { %710 = vmatmul.f32.gmra.mxu2 %v319_v13 }
  0x7f   : > { %496 = vmatmul.f32.gmra.mxu0 %v319_v13  ;;  %v346_v13 = vld [vmem:[%s1322_s20 + $0x178] sm:$0xff] }
  0x84   : > { %1017 = vmatmul.msk.f32.gmra.mxu1 %vm359_vm0, %v322_v14 }
  0x85   : > { %1048 = vmatmul.msk.f32.gmra.mxu3 %vm359_vm0, %v324_v16 }
  0x86   : > { %713 = vmatmul.f32.gmra.mxu2 %v321_v15 }
  0x87   : > { %499 = vmatmul.f32.gmra.mxu0 %v321_v15 }
  0x8c   : > { %1018 = vmatmul.msk.f32.gmra.mxu1 %vm359_vm0, %v324_v16 }
  0x8d   : > { %1049 = vmatmul.msk.f32.gmra.mxu3 %vm359_vm0, %v326_v18 }
  0x8e   : > { %716 = vmatmul.f32.gmra.mxu2 %v323_v17 }
  0x8f   : > { %502 = vmatmul.f32.gmra.mxu0 %v323_v17  ;;  %v345_v17 = vld [vmem:[%s1322_s20 + $0x170] sm:$0xff] }
  0x94   : > { %1019 = vmatmul.msk.f32.gmra.mxu1 %vm359_vm0, %v326_v18 }
  0x95   : > { %1050 = vmatmul.msk.f32.gmra.mxu3 %vm359_vm0, %v328_v20 }
  0x96   : > { %719 = vmatmul.f32.gmra.mxu2 %v325_v19 }
  0x97   : > { %505 = vmatmul.f32.gmra.mxu0 %v325_v19 }
  0x9c   : > { %1020 = vmatmul.msk.f32.gmra.mxu1 %vm359_vm0, %v328_v20 }
  0x9d   : > { %1051 = vmatmul.msk.f32.gmra.mxu3 %vm359_vm0, %v330_v22 }
  0x9e   : > { %722 = vmatmul.f32.gmra.mxu2 %v327_v21 }
  0x9f   : > { %508 = vmatmul.f32.gmra.mxu0 %v327_v21  ;;  %v348_v21 = vld [vmem:[%s1322_s20 + $0x188] sm:$0xff] }
  0xa4   : > { %1021 = vmatmul.msk.f32.gmra.mxu1 %vm359_vm0, %v330_v22 }
  0xa5   : > { %1052 = vmatmul.msk.f32.gmra.mxu3 %vm359_vm0, %v332_v24 }
  0xa6   : > { %725 = vmatmul.f32.gmra.mxu2 %v329_v23 }
  0xa7   : > { %511 = vmatmul.f32.gmra.mxu0 %v329_v23  ;;  %v788_v27 = vpop.f32.mrf.mxu3 }
  0xa9   : > { %v574_v26 = vpop.f32.mrf.mxu1 }
  0xac   : > { %v467_v28 = vpop.f32.mrf.mxu0  ;;  %1022 = vmatmul.msk.f32.gmra.mxu1 %vm359_vm0, %v332_v24 }
  0xad   : > { %v575_v30 = vadd.f32 %v574_v26, %v467_v28  ;;  %1053 = vmatmul.msk.f32.gmra.mxu3 %vm359_vm0, %v334_v29 }
  0xae   : > { %728 = vmatmul.f32.gmra.mxu2 %v331_v25 }
  0xaf   : > { %878 = vst [vmem:[%s1444_s7] sm:$0xff] %v575_v30  ;;  %514 = vmatmul.f32.gmra.mxu0 %v331_v25  ;;  %v347_v25 = vld [vmem:[%s1322_s20 + $0x180] sm:$0xff] }
  0xb0   : > { %v791_v35 = vpop.f32.mrf.mxu3 }
  0xb1   : > { %v681_v31 = vpop.f32.mrf.mxu2  ;;  %v577_v34 = vpop.f32.mrf.mxu1 }
  0xb2   : > { %v789_v32 = vadd.f32 %v788_v27, %v681_v31 }
  0xb4   : > { %880 = vst.msk [vmem:[%s1444_s7 + $0x8] sm:$0xff] %vm879_vm1, %v789_v32  ;;  %v470_v36 = vpop.f32.mrf.mxu0  ;;  %1023 = vmatmul.msk.f32.gmra.mxu1 %vm359_vm0, %v334_v29  ;;  %v350_v29 = vld [vmem:[%s1322_s20 + $0x198] sm:$0xff] }
  0xb5   : > { %v578_v38 = vadd.f32 %v577_v34, %v470_v36  ;;  %1054 = vmatmul.msk.f32.gmra.mxu3 %vm359_vm0, %v336_v37 }
  0xb6   : > { %731 = vmatmul.f32.gmra.mxu2 %v333_v33 }
  0xb7   : > { %881 = vst [vmem:[%s1444_s7 + $0x10] sm:$0xff] %v578_v38  ;;  %517 = vmatmul.f32.gmra.mxu0 %v333_v33  ;;  %v349_v33 = vld [vmem:[%s1322_s20 + $0x190] sm:$0xff] }
  0xb8   : > { %v794_v43 = vpop.f32.mrf.mxu3 }
  0xb9   : > { %v684_v39 = vpop.f32.mrf.mxu2  ;;  %v580_v42 = vpop.f32.mrf.mxu1 }
  0xba   : > { %v792_v40 = vadd.f32 %v791_v35, %v684_v39 }
  0xbc   : > { %882 = vst.msk [vmem:[%s1444_s7 + $0x18] sm:$0xff] %vm879_vm1, %v792_v40  ;;  %v473_v44 = vpop.f32.mrf.mxu0  ;;  %1024 = vmatmul.msk.f32.gmra.mxu1 %vm359_vm0, %v336_v37  ;;  %v352_v37 = vld [vmem:[%s1322_s20 + $0x1a8] sm:$0xff] }
  0xbd   : > { %v581_v46 = vadd.f32 %v580_v42, %v473_v44  ;;  %1055 = vmatmul.msk.f32.gmra.mxu3 %vm359_vm0, %v338_v45 }
  0xbe   : > { %734 = vmatmul.f32.gmra.mxu2 %v335_v41 }
  0xbf   : > { %883 = vst [vmem:[%s1444_s7 + $0x20] sm:$0xff] %v581_v46  ;;  %520 = vmatmul.f32.gmra.mxu0 %v335_v41  ;;  %v351_v41 = vld [vmem:[%s1322_s20 + $0x1a0] sm:$0xff] }
  0xc0   : > { %v797_v51 = vpop.f32.mrf.mxu3 }
  0xc1   : > { %v687_v47 = vpop.f32.mrf.mxu2  ;;  %v583_v50 = vpop.f32.mrf.mxu1 }
  0xc2   : > { %v795_v48 = vadd.f32 %v794_v43, %v687_v47 }
  0xc4   : > { %884 = vst.msk [vmem:[%s1444_s7 + $0x28] sm:$0xff] %vm879_vm1, %v795_v48  ;;  %v476_v52 = vpop.f32.mrf.mxu0  ;;  %1025 = vmatmul.msk.f32.gmra.mxu1 %vm359_vm0, %v338_v45  ;;  %v354_v45 = vld [vmem:[%s1322_s20 + $0x1b8] sm:$0xff] }
  0xc5   : > { %v584_v54 = vadd.f32 %v583_v50, %v476_v52  ;;  %1056 = vmatmul.msk.f32.gmra.mxu3 %vm359_vm0, %v340_v53 }
  0xc6   : > { %737 = vmatmul.f32.gmra.mxu2 %v337_v49 }
  0xc7   : > { %885 = vst [vmem:[%s1444_s7 + $0x30] sm:$0xff] %v584_v54  ;;  %523 = vmatmul.f32.gmra.mxu0 %v337_v49  ;;  %v353_v49 = vld [vmem:[%s1322_s20 + $0x1b0] sm:$0xff] }
  0xc8   : > { %v800_v59 = vpop.f32.mrf.mxu3 }
  0xc9   : > { %v690_v55 = vpop.f32.mrf.mxu2  ;;  %v586_v58 = vpop.f32.mrf.mxu1 }
  0xca   : > { %v798_v56 = vadd.f32 %v797_v51, %v690_v55 }
  0xcc   : > { %886 = vst.msk [vmem:[%s1444_s7 + $0x38] sm:$0xff] %vm879_vm1, %v798_v56  ;;  %v479_v60 = vpop.f32.mrf.mxu0  ;;  %1026 = vmatmul.msk.f32.gmra.mxu1 %vm359_vm0, %v340_v53  ;;  %v356_v53 = vld [vmem:[%s1322_s20 + $0x1c8] sm:$0xff] }
  0xcd   : > { %v587_v62 = vadd.f32 %v586_v58, %v479_v60  ;;  %1057 = vmatmul.msk.f32.gmra.mxu3 %vm359_vm0, %v342_v61 }
  0xce   : > { %740 = vmatmul.f32.gmra.mxu2 %v339_v57 }
  0xcf   : > { %887 = vst [vmem:[%s1444_s7 + $0x40] sm:$0xff] %v587_v62  ;;  %526 = vmatmul.f32.gmra.mxu0 %v339_v57  ;;  %v355_v57 = vld [vmem:[%s1322_s20 + $0x1c0] sm:$0xff] }
  0xd0   : > { %v803_v3 = vpop.f32.mrf.mxu3 }
  0xd1   : > { %v693_v63 = vpop.f32.mrf.mxu2  ;;  %v589_v2 = vpop.f32.mrf.mxu1 }
  0xd2   : > { %v801_v0 = vadd.f32 %v800_v59, %v693_v63 }
  0xd4   : > { %888 = vst.msk [vmem:[%s1444_s7 + $0x48] sm:$0xff] %vm879_vm1, %v801_v0  ;;  %v482_v4 = vpop.f32.mrf.mxu0  ;;  %1027 = vmatmul.msk.f32.gmra.mxu1 %vm359_vm0, %v342_v61  ;;  %v358_v61 = vld [vmem:[%s1322_s20 + $0x1d8] sm:$0xff] }
  0xd5   : > { %v590_v6 = vadd.f32 %v589_v2, %v482_v4  ;;  %1058 = vmatmul.msk.f32.gmra.mxu3 %vm359_vm0, %v344_v5 }
  0xd6   : > { %743 = vmatmul.f32.gmra.mxu2 %v341_v1 }
  0xd7   : > { %889 = vst [vmem:[%s1444_s7 + $0x50] sm:$0xff] %v590_v6  ;;  %529 = vmatmul.f32.gmra.mxu0 %v341_v1  ;;  %v357_v1 = vld [vmem:[%s1322_s20 + $0x1d0] sm:$0xff] }
  0xd8   : > { %v806_v11 = vpop.f32.mrf.mxu3 }
  0xd9   : > { %v696_v7 = vpop.f32.mrf.mxu2  ;;  %v592_v10 = vpop.f32.mrf.mxu1 }
  0xda   : > { %v804_v8 = vadd.f32 %v803_v3, %v696_v7 }
  0xdc   : > { %890 = vst.msk [vmem:[%s1444_s7 + $0x58] sm:$0xff] %vm879_vm1, %v804_v8  ;;  %v485_v12 = vpop.f32.mrf.mxu0  ;;  %1028 = vmatmul.msk.f32.gmra.mxu1 %vm359_vm0, %v344_v5 }
  0xdd   : > { %v593_v14 = vadd.f32 %v592_v10, %v485_v12  ;;  %1059 = vmatmul.msk.f32.gmra.mxu3 %vm359_vm0, %v346_v13 }
  0xde   : > { %746 = vmatmul.f32.gmra.mxu2 %v343_v9 }
  0xdf   : > { %891 = vst [vmem:[%s1444_s7 + $0x60] sm:$0xff] %v593_v14  ;;  %532 = vmatmul.f32.gmra.mxu0 %v343_v9 }
  0xe0   : > { %v809_v19 = vpop.f32.mrf.mxu3 }
  0xe1   : > { %v699_v15 = vpop.f32.mrf.mxu2  ;;  %v595_v18 = vpop.f32.mrf.mxu1 }
  0xe2   : > { %v807_v16 = vadd.f32 %v806_v11, %v699_v15 }
  0xe4   : > { %892 = vst.msk [vmem:[%s1444_s7 + $0x68] sm:$0xff] %vm879_vm1, %v807_v16  ;;  %v488_v20 = vpop.f32.mrf.mxu0  ;;  %1029 = vmatmul.msk.f32.gmra.mxu1 %vm359_vm0, %v346_v13 }
  0xe5   : > { %v596_v22 = vadd.f32 %v595_v18, %v488_v20  ;;  %1060 = vmatmul.msk.f32.gmra.mxu3 %vm359_vm0, %v348_v21 }
  0xe6   : > { %749 = vmatmul.f32.gmra.mxu2 %v345_v17 }
  0xe7   : > { %893 = vst [vmem:[%s1444_s7 + $0x70] sm:$0xff] %v596_v22  ;;  %535 = vmatmul.f32.gmra.mxu0 %v345_v17 }
  0xe8   : > { %v812_v27 = vpop.f32.mrf.mxu3 }
  0xe9   : > { %v702_v23 = vpop.f32.mrf.mxu2  ;;  %v598_v26 = vpop.f32.mrf.mxu1 }
  0xea   : > { %v810_v24 = vadd.f32 %v809_v19, %v702_v23 }
  0xec   : > { %894 = vst.msk [vmem:[%s1444_s7 + $0x78] sm:$0xff] %vm879_vm1, %v810_v24  ;;  %v491_v28 = vpop.f32.mrf.mxu0  ;;  %1030 = vmatmul.msk.f32.gmra.mxu1 %vm359_vm0, %v348_v21 }
  0xed   : > { %v599_v30 = vadd.f32 %v598_v26, %v491_v28  ;;  %1061 = vmatmul.msk.f32.gmra.mxu3 %vm359_vm0, %v350_v29 }
  0xee   : > { %752 = vmatmul.f32.gmra.mxu2 %v347_v25 }
  0xef   : > { %895 = vst [vmem:[%s1444_s7 + $0x80] sm:$0xff] %v599_v30  ;;  %538 = vmatmul.f32.gmra.mxu0 %v347_v25 }
  0xf0   : > { %v815_v35 = vpop.f32.mrf.mxu3 }
  0xf1   : > { %v705_v31 = vpop.f32.mrf.mxu2  ;;  %v601_v34 = vpop.f32.mrf.mxu1 }
  0xf2   : > { %v813_v32 = vadd.f32 %v812_v27, %v705_v31 }
  0xf4   : > { %896 = vst.msk [vmem:[%s1444_s7 + $0x88] sm:$0xff] %vm879_vm1, %v813_v32  ;;  %v494_v36 = vpop.f32.mrf.mxu0  ;;  %1031 = vmatmul.msk.f32.gmra.mxu1 %vm359_vm0, %v350_v29 }
  0xf5   : > { %v602_v38 = vadd.f32 %v601_v34, %v494_v36  ;;  %1062 = vmatmul.msk.f32.gmra.mxu3 %vm359_vm0, %v352_v37 }
  0xf6   : > { %755 = vmatmul.f32.gmra.mxu2 %v349_v33 }
  0xf7   : > { %897 = vst [vmem:[%s1444_s7 + $0x90] sm:$0xff] %v602_v38  ;;  %541 = vmatmul.f32.gmra.mxu0 %v349_v33 }
  0xf8   : > { %v818_v43 = vpop.f32.mrf.mxu3 }
  0xf9   : > { %v708_v39 = vpop.f32.mrf.mxu2  ;;  %v604_v42 = vpop.f32.mrf.mxu1 }
  0xfa   : > { %v816_v40 = vadd.f32 %v815_v35, %v708_v39 }
  0xfc   : > { %898 = vst.msk [vmem:[%s1444_s7 + $0x98] sm:$0xff] %vm879_vm1, %v816_v40  ;;  %v497_v44 = vpop.f32.mrf.mxu0  ;;  %1032 = vmatmul.msk.f32.gmra.mxu1 %vm359_vm0, %v352_v37 }
  0xfd   : > { %v605_v46 = vadd.f32 %v604_v42, %v497_v44  ;;  %1063 = vmatmul.msk.f32.gmra.mxu3 %vm359_vm0, %v354_v45 }
  0xfe   : > { %758 = vmatmul.f32.gmra.mxu2 %v351_v41 }
  0xff   : > { %899 = vst [vmem:[%s1444_s7 + $0xa0] sm:$0xff] %v605_v46  ;;  %544 = vmatmul.f32.gmra.mxu0 %v351_v41 }
 0x100   : > { %v821_v51 = vpop.f32.mrf.mxu3 }
 0x101   : > { %v711_v47 = vpop.f32.mrf.mxu2  ;;  %v607_v50 = vpop.f32.mrf.mxu1 }
 0x102   : > { %v819_v48 = vadd.f32 %v818_v43, %v711_v47 }
 0x104   : > { %900 = vst.msk [vmem:[%s1444_s7 + $0xa8] sm:$0xff] %vm879_vm1, %v819_v48  ;;  %v500_v52 = vpop.f32.mrf.mxu0  ;;  %1033 = vmatmul.msk.f32.gmra.mxu1 %vm359_vm0, %v354_v45 }
 0x105   : > { %v608_v54 = vadd.f32 %v607_v50, %v500_v52  ;;  %1064 = vmatmul.msk.f32.gmra.mxu3 %vm359_vm0, %v356_v53 }
 0x106   : > { %761 = vmatmul.f32.gmra.mxu2 %v353_v49 }
 0x107   : > { %901 = vst [vmem:[%s1444_s7 + $0xb0] sm:$0xff] %v608_v54  ;;  %547 = vmatmul.f32.gmra.mxu0 %v353_v49 }
 0x108   : > { %v824_v59 = vpop.f32.mrf.mxu3 }
 0x109   : > { %v714_v55 = vpop.f32.mrf.mxu2  ;;  %v610_v58 = vpop.f32.mrf.mxu1 }
 0x10a   : > { %v822_v56 = vadd.f32 %v821_v51, %v714_v55 }
 0x10c   : > { %902 = vst.msk [vmem:[%s1444_s7 + $0xb8] sm:$0xff] %vm879_vm1, %v822_v56  ;;  %v503_v60 = vpop.f32.mrf.mxu0  ;;  %1034 = vmatmul.msk.f32.gmra.mxu1 %vm359_vm0, %v356_v53 }
 0x10d   : > { %v611_v62 = vadd.f32 %v610_v58, %v503_v60  ;;  %1065 = vmatmul.msk.f32.gmra.mxu3 %vm359_vm0, %v358_v61 }
 0x10e   : > { %764 = vmatmul.f32.gmra.mxu2 %v355_v57 }
 0x10f   : > { %903 = vst [vmem:[%s1444_s7 + $0xc0] sm:$0xff] %v611_v62  ;;  %550 = vmatmul.f32.gmra.mxu0 %v355_v57 }
 0x110   : > { %v827_v3 = vpop.f32.mrf.mxu3 }
 0x111   : > { %v717_v63 = vpop.f32.mrf.mxu2  ;;  %v613_v2 = vpop.f32.mrf.mxu1 }
 0x112   : > { %v825_v0 = vadd.f32 %v824_v59, %v717_v63 }
 0x114   : > { %904 = vst.msk [vmem:[%s1444_s7 + $0xc8] sm:$0xff] %vm879_vm1, %v825_v0  ;;  %v506_v4 = vpop.f32.mrf.mxu0  ;;  %1035 = vmatmul.msk.f32.gmra.mxu1 %vm359_vm0, %v358_v61 }
 0x115   : > { %v614_v5 = vadd.f32 %v613_v2, %v506_v4 }
 0x116   : > { %767 = vmatmul.f32.gmra.mxu2 %v357_v1 }
 0x117   : > { %905 = vst [vmem:[%s1444_s7 + $0xd0] sm:$0xff] %v614_v5  ;;  %553 = vmatmul.f32.gmra.mxu0 %v357_v1 }
 0x118   : > { %v830_v9 = vpop.f32.mrf.mxu3 }
 0x119   : > { %v720_v6 = vpop.f32.mrf.mxu2  ;;  %v616_v8 = vpop.f32.mrf.mxu1 }
 0x11a   : > { %v828_v7 = vadd.f32 %v827_v3, %v720_v6 }
 0x11c   : > { %906 = vst.msk [vmem:[%s1444_s7 + $0xd8] sm:$0xff] %vm879_vm1, %v828_v7  ;;  %v509_v10 = vpop.f32.mrf.mxu0 }
 0x11d   : > { %v617_v11 = vadd.f32 %v616_v8, %v509_v10 }
 0x11f   : > { %907 = vst [vmem:[%s1444_s7 + $0xe0] sm:$0xff] %v617_v11 }
 0x120   : > { %v833_v15 = vpop.f32.mrf.mxu3 }
 0x121   : > { %v723_v12 = vpop.f32.mrf.mxu2  ;;  %v619_v14 = vpop.f32.mrf.mxu1 }
 0x122   : > { %v831_v13 = vadd.f32 %v830_v9, %v723_v12 }
 0x124   : > { %908 = vst.msk [vmem:[%s1444_s7 + $0xe8] sm:$0xff] %vm879_vm1, %v831_v13  ;;  %v512_v16 = vpop.f32.mrf.mxu0 }
 0x125   : > { %v620_v17 = vadd.f32 %v619_v14, %v512_v16 }
 0x127   : > { %909 = vst [vmem:[%s1444_s7 + $0xf0] sm:$0xff] %v620_v17 }
 0x128   : > { %v836_v21 = vpop.f32.mrf.mxu3 }
 0x129   : > { %v726_v18 = vpop.f32.mrf.mxu2  ;;  %v622_v20 = vpop.f32.mrf.mxu1 }
 0x12a   : > { %v834_v19 = vadd.f32 %v833_v15, %v726_v18 }
 0x12c   : > { %910 = vst.msk [vmem:[%s1444_s7 + $0xf8] sm:$0xff] %vm879_vm1, %v834_v19  ;;  %v515_v22 = vpop.f32.mrf.mxu0 }
 0x12d   : > { %v623_v23 = vadd.f32 %v622_v20, %v515_v22 }
 0x12f   : > { %911 = vst [vmem:[%s1444_s7 + $0x100] sm:$0xff] %v623_v23 }
 0x130   : > { %v839_v27 = vpop.f32.mrf.mxu3 }
 0x131   : > { %v729_v24 = vpop.f32.mrf.mxu2  ;;  %v625_v26 = vpop.f32.mrf.mxu1 }
 0x132   : > { %v837_v25 = vadd.f32 %v836_v21, %v729_v24 }
 0x134   : > { %912 = vst.msk [vmem:[%s1444_s7 + $0x108] sm:$0xff] %vm879_vm1, %v837_v25  ;;  %v518_v28 = vpop.f32.mrf.mxu0 }
 0x135   : > { %v626_v29 = vadd.f32 %v625_v26, %v518_v28 }
 0x137   : > { %913 = vst [vmem:[%s1444_s7 + $0x110] sm:$0xff] %v626_v29 }
 0x138   : > { %v842_v33 = vpop.f32.mrf.mxu3 }
 0x139   : > { %v732_v30 = vpop.f32.mrf.mxu2  ;;  %v628_v32 = vpop.f32.mrf.mxu1 }
 0x13a   : > { %v840_v31 = vadd.f32 %v839_v27, %v732_v30 }
 0x13c   : > { %914 = vst.msk [vmem:[%s1444_s7 + $0x118] sm:$0xff] %vm879_vm1, %v840_v31  ;;  %v521_v34 = vpop.f32.mrf.mxu0 }
 0x13d   : > { %v629_v35 = vadd.f32 %v628_v32, %v521_v34 }
 0x13f   : > { %915 = vst [vmem:[%s1444_s7 + $0x120] sm:$0xff] %v629_v35 }
 0x140   : > { %v845_v39 = vpop.f32.mrf.mxu3 }
 0x141   : > { %v735_v36 = vpop.f32.mrf.mxu2  ;;  %v631_v38 = vpop.f32.mrf.mxu1 }
 0x142   : > { %v843_v37 = vadd.f32 %v842_v33, %v735_v36 }
 0x144   : > { %916 = vst.msk [vmem:[%s1444_s7 + $0x128] sm:$0xff] %vm879_vm1, %v843_v37  ;;  %v524_v40 = vpop.f32.mrf.mxu0 }
 0x145   : > { %v632_v41 = vadd.f32 %v631_v38, %v524_v40 }
 0x147   : > { %917 = vst [vmem:[%s1444_s7 + $0x130] sm:$0xff] %v632_v41 }
 0x148   : > { %v848_v45 = vpop.f32.mrf.mxu3 }
 0x149   : > { %v738_v42 = vpop.f32.mrf.mxu2  ;;  %v634_v44 = vpop.f32.mrf.mxu1 }
 0x14a   : > { %v846_v43 = vadd.f32 %v845_v39, %v738_v42 }
 0x14c   : > { %918 = vst.msk [vmem:[%s1444_s7 + $0x138] sm:$0xff] %vm879_vm1, %v846_v43  ;;  %v527_v46 = vpop.f32.mrf.mxu0 }
 0x14d   : > { %v635_v47 = vadd.f32 %v634_v44, %v527_v46 }
 0x14f   : > { %919 = vst [vmem:[%s1444_s7 + $0x140] sm:$0xff] %v635_v47 }
 0x150   : > { %v851_v51 = vpop.f32.mrf.mxu3 }
 0x151   : > { %v741_v48 = vpop.f32.mrf.mxu2  ;;  %v637_v50 = vpop.f32.mrf.mxu1 }
 0x152   : > { %v849_v49 = vadd.f32 %v848_v45, %v741_v48 }
 0x154   : > { %920 = vst.msk [vmem:[%s1444_s7 + $0x148] sm:$0xff] %vm879_vm1, %v849_v49  ;;  %v530_v52 = vpop.f32.mrf.mxu0 }
 0x155   : > { %v638_v53 = vadd.f32 %v637_v50, %v530_v52 }
 0x157   : > { %921 = vst [vmem:[%s1444_s7 + $0x150] sm:$0xff] %v638_v53 }
 0x158   : > { %v854_v57 = vpop.f32.mrf.mxu3 }
 0x159   : > { %v744_v54 = vpop.f32.mrf.mxu2  ;;  %v640_v56 = vpop.f32.mrf.mxu1 }
 0x15a   : > { %v852_v55 = vadd.f32 %v851_v51, %v744_v54 }
 0x15c   : > { %922 = vst.msk [vmem:[%s1444_s7 + $0x158] sm:$0xff] %vm879_vm1, %v852_v55  ;;  %v533_v58 = vpop.f32.mrf.mxu0 }
 0x15d   : > { %v641_v59 = vadd.f32 %v640_v56, %v533_v58 }
 0x15f   : > { %923 = vst [vmem:[%s1444_s7 + $0x160] sm:$0xff] %v641_v59 }
 0x160   : > { %v857_v63 = vpop.f32.mrf.mxu3 }
 0x161   : > { %v747_v60 = vpop.f32.mrf.mxu2  ;;  %v643_v62 = vpop.f32.mrf.mxu1 }
 0x162   : > { %v855_v61 = vadd.f32 %v854_v57, %v747_v60 }
 0x164   : > { %924 = vst.msk [vmem:[%s1444_s7 + $0x168] sm:$0xff] %vm879_vm1, %v855_v61  ;;  %v536_v0 = vpop.f32.mrf.mxu0 }
 0x165   : > { %v644_v1 = vadd.f32 %v643_v62, %v536_v0 }
 0x167   : > { %925 = vst [vmem:[%s1444_s7 + $0x170] sm:$0xff] %v644_v1 }
 0x168   : > { %v860_v5 = vpop.f32.mrf.mxu3 }
 0x169   : > { %v750_v2 = vpop.f32.mrf.mxu2  ;;  %v646_v4 = vpop.f32.mrf.mxu1 }
 0x16a   : > { %v858_v3 = vadd.f32 %v857_v63, %v750_v2 }
 0x16c   : > { %926 = vst.msk [vmem:[%s1444_s7 + $0x178] sm:$0xff] %vm879_vm1, %v858_v3  ;;  %v539_v6 = vpop.f32.mrf.mxu0 }
 0x16d   : > { %v647_v7 = vadd.f32 %v646_v4, %v539_v6 }
 0x16f   : > { %927 = vst [vmem:[%s1444_s7 + $0x180] sm:$0xff] %v647_v7 }
 0x170   : > { %v863_v11 = vpop.f32.mrf.mxu3 }
 0x171   : > { %v753_v8 = vpop.f32.mrf.mxu2  ;;  %v649_v10 = vpop.f32.mrf.mxu1 }
 0x172   : > { %v861_v9 = vadd.f32 %v860_v5, %v753_v8 }
 0x174   : > { %928 = vst.msk [vmem:[%s1444_s7 + $0x188] sm:$0xff] %vm879_vm1, %v861_v9  ;;  %v542_v12 = vpop.f32.mrf.mxu0 }
 0x175   : > { %v650_v13 = vadd.f32 %v649_v10, %v542_v12 }
 0x177   : > { %929 = vst [vmem:[%s1444_s7 + $0x190] sm:$0xff] %v650_v13 }
 0x178   : > { %v866_v17 = vpop.f32.mrf.mxu3 }
 0x179   : > { %v756_v14 = vpop.f32.mrf.mxu2  ;;  %v652_v16 = vpop.f32.mrf.mxu1 }
 0x17a   : > { %v864_v15 = vadd.f32 %v863_v11, %v756_v14 }
 0x17c   : > { %930 = vst.msk [vmem:[%s1444_s7 + $0x198] sm:$0xff] %vm879_vm1, %v864_v15  ;;  %v545_v18 = vpop.f32.mrf.mxu0 }
 0x17d   : > { %v653_v19 = vadd.f32 %v652_v16, %v545_v18 }
 0x17f   : > { %931 = vst [vmem:[%s1444_s7 + $0x1a0] sm:$0xff] %v653_v19 }
 0x180   : > { %v869_v23 = vpop.f32.mrf.mxu3 }
 0x181   : > { %v759_v20 = vpop.f32.mrf.mxu2  ;;  %v655_v22 = vpop.f32.mrf.mxu1 }
 0x182   : > { %v867_v21 = vadd.f32 %v866_v17, %v759_v20 }
 0x184   : > { %932 = vst.msk [vmem:[%s1444_s7 + $0x1a8] sm:$0xff] %vm879_vm1, %v867_v21  ;;  %v548_v24 = vpop.f32.mrf.mxu0 }
 0x185   : > { %v656_v25 = vadd.f32 %v655_v22, %v548_v24 }
 0x187   : > { %933 = vst [vmem:[%s1444_s7 + $0x1b0] sm:$0xff] %v656_v25 }
 0x188   : > { %v872_v30 = vpop.f32.mrf.mxu3 }
 0x189   : > { %v762_v26 = vpop.f32.mrf.mxu2  ;;  %v658_v28 = vpop.f32.mrf.mxu1 }
 0x18a   : > { %v870_v27 = vadd.f32 %v869_v23, %v762_v26 }
 0x18c   : > { %934 = vst.msk [vmem:[%s1444_s7 + $0x1b8] sm:$0xff] %vm879_vm1, %v870_v27  ;;  %v551_v29 = vpop.f32.mrf.mxu0 }
 0x18d   : > { %v659_v31 = vadd.f32 %v658_v28, %v551_v29 }
 0x18f   : > { %935 = vst [vmem:[%s1444_s7 + $0x1c0] sm:$0xff] %v659_v31 }
 0x190   : > { %v875_v37 = vpop.f32.mrf.mxu3 }
 0x191   : > { %v765_v32 = vpop.f32.mrf.mxu2  ;;  %v661_v34 = vpop.f32.mrf.mxu1 }
 0x192   : > { %v873_v33 = vadd.f32 %v872_v30, %v765_v32 }
 0x194   : > { %936 = vst.msk [vmem:[%s1444_s7 + $0x1c8] sm:$0xff] %vm879_vm1, %v873_v33  ;;  %v554_v35 = vpop.f32.mrf.mxu0 }
 0x195   : > { %v662_v36 = vadd.f32 %v661_v34, %v554_v35 }
 0x197   : > { %937 = vst [vmem:[%s1444_s7 + $0x1d0] sm:$0xff] %v662_v36 }
 0x199   : > { %v768_v38 = vpop.f32.mrf.mxu2 }
 0x19a   : > { %v876_v39 = vadd.f32 %v875_v37, %v768_v38 }
 0x19c   : > { %938 = vst.msk [vmem:[%s1444_s7 + $0x1d8] sm:$0xff] %vm879_vm1, %v876_v39 }
 0x19d PF: > { %s13_s12 = sadd.s32 1, %s1084_s12  }
 0x19e   : > { %p10_p4 = scmp.ge.s32.totalorder %s13_s12, 6  }
 0x1a0   :  { %12 = sbr.rel (!%p10_p4) target bundleno = 1 (0x1), region = 62 }

</bundles_post_ra>
